<compile_context>
chip_gen: v6e
topology: v6e:2x2x1
jax: 0.10.0
libtpu: 0.0.40
codegen_flags: <defaults>
</compile_context>

<pallas_src>
import functools
import math

import jax
import jax.numpy as jnp
from jax import lax
from jax.experimental import pallas as pl
from jax.experimental.pallas import tpu as pltpu


def _reduce_to_slab(x):
    """Reduce an (R, C) f32 array (R % 8 == 0, C % 128 == 0) to an (8, 128)
    slab using only vreg-aligned static slices + elementwise adds (VALU)."""
    R, C = x.shape
    if C > 128:
        acc = x[:, 0:128]
        for g in range(1, C // 128):
            acc = acc + x[:, g * 128:(g + 1) * 128]
        x = acc
    if R > 8:
        acc = x[0:8, :]
        for g in range(1, R // 8):
            acc = acc + x[g * 8:(g + 1) * 8, :]
        x = acc
    return x


def _tacotron2_loss_kernel(olens_ref, ilens_ref,
                           after_ref, before_ref, ys_ref,
                           logits_ref, labels_ref, att_ref, out_ref,
                           *, TL, TLF, Tpad, Lpad, odim,
                           sigma, bce_pos_weight):
    b = pl.program_id(0)
    t = pl.program_id(1)
    olen = olens_ref[b]          # int32 scalar (SMEM)
    ilen = ilens_ref[b]          # int32 scalar (SMEM)

    # ---- init accumulator + stop-token BCE (once per batch row) ----
    @pl.when(t == 0)
    def _init():
        out_ref[...] = jnp.zeros_like(out_ref)
        x = logits_ref[pl.ds(b, 1), :].astype(jnp.float32)      # (1, Lpad)
        z = labels_ref[pl.ds(b, 1), :].astype(jnp.float32)
        frame = lax.broadcasted_iota(jnp.int32, (1, Lpad), 1)
        fmask = (frame < olen).astype(jnp.float32)
        # numerically-stable BCE with logits
        per = jnp.maximum(x, 0.0) - x * z + jnp.log1p(jnp.exp(-jnp.abs(x)))
        # weights = ones.masked_fill(labels == 1, pos_weight); exact for 0/1 labels
        w = 1.0 + (jnp.float32(bce_pos_weight) - 1.0) * z
        bce_sum = jnp.sum(per * w * fmask)
        r8 = lax.broadcasted_iota(jnp.int32, (8, 128), 0)
        c8 = lax.broadcasted_iota(jnp.int32, (8, 128), 1)
        out_ref[0, 2] = jnp.where(jnp.logical_and(r8 == 0, c8 == 0),
                                  bce_sum, jnp.float32(0.0))

    # ---- masked L1 + MSE partial sums for this (batch, time) tile ----
    # mel tiles are lane-dense: (TLF, 128) rows of the flattened (L*odim) axis.
    a = after_ref[0].astype(jnp.float32)
    bf = before_ref[0].astype(jnp.float32)
    y = ys_ref[0].astype(jnp.float32)
    row = lax.broadcasted_iota(jnp.int32, (TLF, 128), 0)
    lane = lax.broadcasted_iota(jnp.int32, (TLF, 128), 1)
    flat = (t * TLF + row) * 128 + lane                  # index into (L*odim)
    valid = (flat < olen * odim).astype(jnp.float32)
    da = (a - y) * valid
    db = (bf - y) * valid
    out_ref[0, 0] += _reduce_to_slab(jnp.abs(da) + jnp.abs(db))   # L1 numerator
    out_ref[0, 1] += _reduce_to_slab(da * da + db * db)           # MSE numerator

    # ---- guided attention partial sums (divisions hoisted out of 2D) ----
    att = att_ref[0].astype(jnp.float32)                 # (TL, Tpad)
    inv_ol = 1.0 / olen.astype(jnp.float32)
    inv_il = 1.0 / ilen.astype(jnp.float32)
    o_idx = lax.broadcasted_iota(jnp.int32, (TL, 1), 0) + t * TL
    i_idx = lax.broadcasted_iota(jnp.int32, (1, Tpad), 1)
    o_scaled = o_idx.astype(jnp.float32) * inv_ol        # (TL, 1)
    i_scaled = i_idx.astype(jnp.float32) * inv_il        # (1, Tpad)
    diag = i_scaled - o_scaled                           # (TL, Tpad)
    gm = 1.0 - jnp.exp(diag * diag * jnp.float32(-1.0 / (2.0 * sigma * sigma)))
    amask = jnp.logical_and(o_idx < olen, i_idx < ilen)  # (TL, Tpad)
    out_ref[0, 3] += _reduce_to_slab(jnp.where(amask, gm * att, 0.0))


def _pad_axis(x, axis, target):
    cur = x.shape[axis]
    if cur == target:
        return x
    pads = [(0, 0)] * x.ndim
    pads[axis] = (0, target - cur)
    return jnp.pad(x, pads)


def tacotron2_loss(after_outs, before_outs, ys, logits, labels, att_ws,
                   ilens, olens, *, sigma=0.4, alpha=1.0, bce_pos_weight=1.0,
                   target_time_block=256):
    """Returns [loss, attn_loss, l1_loss, mse_loss, bce_loss] as float32[5]."""
    B, L, odim = ys.shape
    _, Lout, Tin = att_ws.shape
    assert Lout == L, "reduction_factor == 1 assumed"

    # --- tile-size selection: TL frames per time block such that ---
    #   TL % 8 == 0 (att sublane tile)  and  TL*odim % 1024 == 0 (lane-dense mel)
    base = 1024 // math.gcd(odim, 1024)
    tl_min = (base * 8) // math.gcd(base, 8)          # lcm(base, 8)
    nblk_needed = -(-L // tl_min)
    factor = max(1, min(max(target_time_block // tl_min, 1), nblk_needed))
    TL = tl_min * factor
    Lpad = -(-L // TL) * TL
    n_t = Lpad // TL
    TLF = (TL * odim) // 128                           # mel tile sublane rows
    Fpad = (Lpad * odim) // 128
    Tpad = -(-Tin // 128) * 128

    # --- layout prep (native dtype preserved; upcast happens per-tile) ---
    def prep_mel(x):
        x = x.reshape(B, L * odim)                     # zero-cost flatten
        x = _pad_axis(x, 1, Lpad * odim)
        return x.reshape(B, Fpad, 128)                 # lane-dense rows

    after_p = prep_mel(after_outs)
    before_p = prep_mel(before_outs)
    ys_p = prep_mel(ys)
    logits_p = _pad_axis(logits, 1, Lpad)
    labels_p = _pad_axis(labels, 1, Lpad)
    att_p = _pad_axis(_pad_axis(att_ws, 1, Lpad), 2, Tpad)
    olens_i = jnp.asarray(olens).reshape(B).astype(jnp.int32)
    ilens_i = jnp.asarray(ilens).reshape(B).astype(jnp.int32)

    kernel = functools.partial(
        _tacotron2_loss_kernel,
        TL=TL, TLF=TLF, Tpad=Tpad, Lpad=Lpad, odim=odim,
        sigma=float(sigma), bce_pos_weight=float(bce_pos_weight))

    grid_spec = pltpu.PrefetchScalarGridSpec(
        num_scalar_prefetch=2,            # olens, ilens -> SMEM
        grid=(B, n_t),
        in_specs=[
            pl.BlockSpec((1, TLF, 128), lambda b, t, *_: (b, t, 0)),  # after
            pl.BlockSpec((1, TLF, 128), lambda b, t, *_: (b, t, 0)),  # before
            pl.BlockSpec((1, TLF, 128), lambda b, t, *_: (b, t, 0)),  # ys
            pl.BlockSpec((B, Lpad), lambda b, t, *_: (0, 0)),         # logits
            pl.BlockSpec((B, Lpad), lambda b, t, *_: (0, 0)),         # labels
            pl.BlockSpec((1, TL, Tpad), lambda b, t, *_: (b, t, 0)),  # att_ws
        ],
        out_specs=pl.BlockSpec((1, 4, 8, 128), lambda b, t, *_: (b, 0, 0, 0)),
    )

    # advisory cost model for XLA scheduling around the custom call
    mel_elems = B * Fpad * 128
    att_elems = B * Lpad * Tpad
    bce_elems = B * Lpad
    bytes_accessed = sum(int(x.size) * x.dtype.itemsize
                         for x in (after_p, before_p, ys_p, logits_p, labels_p,
                                   att_p, olens_i, ilens_i))
    bytes_accessed += B * 4 * 8 * 128 * 4
    cost = pl.CostEstimate(flops=14 * mel_elems + 8 * att_elems + 10 * bce_elems,
                           transcendentals=att_elems + 2 * bce_elems,
                           bytes_accessed=bytes_accessed)

    partials = pl.pallas_call(
        kernel,
        out_shape=jax.ShapeDtypeStruct((B, 4, 8, 128), jnp.float32),
        grid_spec=grid_spec,
        compiler_params=pltpu.CompilerParams(
            dimension_semantics=("parallel", "arbitrary"),
            vmem_limit_bytes=32 * 1024 * 1024),
        cost_estimate=cost,
    )(olens_i, ilens_i, after_p, before_p, ys_p, logits_p, labels_p, att_p)

    # --- tiny final reduction + analytic denominators in plain JAX ---
    sums = jnp.sum(partials, axis=(0, 2, 3))           # [l1, mse, bce, att] raw sums
    olens_f = olens_i.astype(jnp.float32)
    ilens_f = ilens_i.astype(jnp.float32)
    n_frames = jnp.sum(olens_f)                        # == sum(make_non_pad_mask)
    n_feat = n_frames * jnp.float32(odim)
    amask_sum = jnp.sum(olens_f * ilens_f)             # == sum(attention mask)
    l1_loss = sums[0] / n_feat
    mse_loss = sums[1] / n_feat
    bce_loss = sums[2] / n_frames
    attn_loss = jnp.float32(alpha) * sums[3] / amask_sum
    loss = l1_loss + mse_loss + bce_loss + attn_loss
    return jnp.stack([loss, attn_loss, l1_loss, mse_loss, bce_loss])


def _reference_loss(after, before, ys, logits, labels, att, ilens, olens,
                    sigma=0.4, alpha=1.0, bce_pos_weight=1.0):
    """Pure-JAX reference mirroring PyTorch Tacotron2Loss.forward."""
    B, L, odim = ys.shape
    _, Lout, Tin = att.shape
    mask2d = (jnp.arange(L)[None, :] < olens[:, None]).astype(jnp.float32)
    mask3d = mask2d[:, :, None]
    n_frames = jnp.sum(mask2d)
    n_feat = n_frames * odim
    l1 = (jnp.sum(jnp.abs(after - ys) * mask3d)
          + jnp.sum(jnp.abs(before - ys) * mask3d)) / n_feat
    mse = (jnp.sum(((after - ys) ** 2) * mask3d)
           + jnp.sum(((before - ys) ** 2) * mask3d)) / n_feat
    per = jnp.maximum(logits, 0.) - logits * labels + jnp.log1p(jnp.exp(-jnp.abs(logits)))
    w = jnp.where(labels == 1.0, bce_pos_weight, 1.0)
    bce = jnp.sum(per * w * mask2d) / n_frames
    o_idx = jnp.arange(Lout)[None, :, None].astype(jnp.float32)
    i_idx = jnp.arange(Tin)[None, None, :].astype(jnp.float32)
    ol = olens[:, None, None].astype(jnp.float32)
    il = ilens[:, None, None].astype(jnp.float32)
    gm = 1.0 - jnp.exp(-((i_idx / il - o_idx / ol) ** 2) / (2 * sigma ** 2))
    amask = ((o_idx < ol) & (i_idx < il)).astype(jnp.float32)
    attn = alpha * jnp.sum(gm * att * amask) / jnp.sum(amask)
    loss = l1 + mse + bce + attn
    return jnp.stack([loss, attn, l1, mse, bce])


# TODO(synk): the wrapped Tacotron2 acoustic model forward (self.model(...)),
# Reporter/chainer reporting, logging, the CBHG branch and the
# reduction_factor>1 trimming have no Pallas equivalent; model outputs are
# synthesized deterministically below instead.

if __name__ == "__main__":
    key = jax.random.PRNGKey(0)
    B, Lmax, Tmax, odim = 2, 16, 16, 16   # Lmax == max(olens), Tmax == max(ilens)
    olens = jnp.array([16, 11], dtype=jnp.int32)
    ilens = jnp.array([16, 9], dtype=jnp.int32)

    k1, k2, k3, k4, k5 = jax.random.split(key, 5)
    ys = jax.random.normal(k1, (B, Lmax, odim), dtype=jnp.float32)
    after_outs = ys + 0.1 * jax.random.normal(k2, (B, Lmax, odim), dtype=jnp.float32)
    before_outs = ys + 0.2 * jax.random.normal(k3, (B, Lmax, odim), dtype=jnp.float32)
    logits = jax.random.normal(k4, (B, Lmax), dtype=jnp.float32)
    # stop-token labels: 1.0 at the last valid frame of each utterance
    labels = (jnp.arange(Lmax)[None, :] == (olens[:, None] - 1)).astype(jnp.float32)
    # attention weights: normalized over input time
    att_raw = jax.nn.softmax(jax.random.normal(k5, (B, Lmax, Tmax), dtype=jnp.float32), axis=-1)

    out = tacotron2_loss(after_outs, before_outs, ys, logits, labels, att_raw,
                         ilens, olens, sigma=0.4, alpha=1.0, bce_pos_weight=1.0)
    out = jax.block_until_ready(out)

    ref = _reference_loss(after_outs, before_outs, ys, logits, labels, att_raw,
                          ilens, olens, sigma=0.4, alpha=1.0, bce_pos_weight=1.0)
    ref = jax.block_until_ready(ref)

    assert jnp.allclose(out, ref, rtol=1e-4, atol=1e-5), (out, ref)
    print("KERNEL_OK")
</pallas_src>

<mosaic_0001>
module attributes {stable_mosaic.version = 11 : i64} {
  func.func @_tacotron2_loss_kernel(%arg0: i32, %arg1: i32, %arg2: memref<2xi32, #tpu.memory_space<smem>>, %arg3: memref<2xi32, #tpu.memory_space<smem>>, %arg4: memref<1x8x128xf32, #tpu.memory_space<vmem>>, %arg5: memref<1x8x128xf32, #tpu.memory_space<vmem>>, %arg6: memref<1x8x128xf32, #tpu.memory_space<vmem>>, %arg7: memref<2x64xf32, #tpu.memory_space<vmem>>, %arg8: memref<2x64xf32, #tpu.memory_space<vmem>>, %arg9: memref<1x64x128xf32, #tpu.memory_space<vmem>>, %arg10: memref<1x4x8x128xf32, #tpu.memory_space<vmem>>) attributes {dimension_semantics = [#tpu.dimension_semantics<parallel>, #tpu.dimension_semantics<arbitrary>], iteration_bounds = array<i64: 2, 1>, scalar_prefetch = 2 : i64, scratch_operands = 0 : i64, tpu.core_type = #tpu.core_type<tc>, window_params = [{transform_indices = @transform_0, window_bounds = array<i64: 1, 8, 128>}, {transform_indices = @transform_1, window_bounds = array<i64: 1, 8, 128>}, {transform_indices = @transform_2, window_bounds = array<i64: 1, 8, 128>}, {pipeline_mode = #tpu.pipeline_mode<synchronous>, transform_indices = @transform_3, window_bounds = array<i64: 2, 64>}, {pipeline_mode = #tpu.pipeline_mode<synchronous>, transform_indices = @transform_4, window_bounds = array<i64: 2, 64>}, {transform_indices = @transform_5, window_bounds = array<i64: 1, 64, 128>}, {transform_indices = @transform_6, window_bounds = array<i64: 1, 4, 8, 128>}]} {
    %0 = arith.index_cast %arg0 : i32 to index
    %1 = memref.load %arg2[%0] : memref<2xi32, #tpu.memory_space<smem>>
    %2 = arith.index_cast %arg0 : i32 to index
    %3 = memref.load %arg3[%2] : memref<2xi32, #tpu.memory_space<smem>>
    %c0_i32 = arith.constant 0 : i32
    %4 = arith.cmpi eq, %arg1, %c0_i32 : i32
    %5 = arith.extui %4 : i1 to i32
    %c0_i32_0 = arith.constant 0 : i32
    %6 = arith.cmpi ne, %5, %c0_i32_0 : i32
    scf.if %6 {
      %cst_38 = arith.constant 0.000000e+00 : f32
      %105 = vector.broadcast %cst_38 : f32 to vector<1x4x8x128xf32>
      %c0_39 = arith.constant 0 : index
      %c0_40 = arith.constant 0 : index
      %c0_41 = arith.constant 0 : index
      %c0_42 = arith.constant 0 : index
      %106 = vector.load %arg10[%c0_39, %c0_40, %c0_41, %c0_42] : memref<1x4x8x128xf32, #tpu.memory_space<vmem>>, vector<1x4x8x128xf32>
      tpu.vector_store %arg10[%c0_39, %c0_40, %c0_41, %c0_42], %105 {strides = array<i32>} : memref<1x4x8x128xf32, #tpu.memory_space<vmem>>, vector<1x4x8x128xf32>,
      %107 = arith.index_cast %arg0 : i32 to index
      %c0_43 = arith.constant 0 : index
      %108 = vector.load %arg7[%107, %c0_43] : memref<2x64xf32, #tpu.memory_space<vmem>>, vector<1x64xf32>
      %109 = arith.index_cast %arg0 : i32 to index
      %c0_44 = arith.constant 0 : index
      %110 = vector.load %arg8[%109, %c0_44] : memref<2x64xf32, #tpu.memory_space<vmem>>, vector<1x64xf32>
      %111 = tpu.iota {dimensions = array<i32: 1>} : vector<1x64xi32>
      %112 = vector.broadcast %1 : i32 to vector<1x64xi32>
      %113 = arith.cmpi slt, %111, %112 : vector<1x64xi32>
      %114 = arith.extui %113 : vector<1x64xi1> to vector<1x64xi32>
      %115 = arith.sitofp %114 : vector<1x64xi32> to vector<1x64xf32>
      %cst_45 = arith.constant 0.000000e+00 : f32
      %116 = vector.broadcast %cst_45 : f32 to vector<1x64xf32>
      %117 = arith.maximumf %108, %116 : vector<1x64xf32>
      %118 = arith.mulf %108, %110 : vector<1x64xf32>
      %119 = arith.subf %117, %118 : vector<1x64xf32>
      %120 = math.absf %108 : vector<1x64xf32>
      %cst_46 = arith.constant 0.000000e+00 : f32
      %121 = vector.broadcast %cst_46 : f32 to vector<1x64xf32>
      %122 = arith.subf %121, %120 : vector<1x64xf32>
      %123 = math.exp %122 : vector<1x64xf32>
      %124 = math.log1p %123 : vector<1x64xf32>
      %125 = arith.addf %119, %124 : vector<1x64xf32>
      %cst_47 = arith.constant 1.000000e+00 : f32
      %cst_48 = arith.constant 1.000000e+00 : f32
      %126 = arith.subf %cst_47, %cst_48 : f32
      %127 = vector.broadcast %126 : f32 to vector<1x64xf32>
      %128 = arith.mulf %127, %110 : vector<1x64xf32>
      %cst_49 = arith.constant 1.000000e+00 : f32
      %129 = vector.broadcast %cst_49 : f32 to vector<1x64xf32>
      %130 = arith.addf %129, %128 : vector<1x64xf32>
      %131 = arith.mulf %125, %130 : vector<1x64xf32>
      %132 = arith.mulf %131, %115 : vector<1x64xf32>
      %133 = vector.shape_cast %132 : vector<1x64xf32> to vector<1x1x64xf32>
      %cst_50 = arith.constant dense<0.000000e+00> : vector<1xf32>
      %134 = vector.multi_reduction <add>, %133, %cst_50 [1, 2] : vector<1x1x64xf32> to vector<1xf32>
      %135 = vector.shape_cast %134 : vector<1xf32> to vector<1x1x1xf32>
      %136 = vector.extract %135[0, 0, 0] : f32 from vector<1x1x1xf32>
      %137 = tpu.iota {dimensions = array<i32: 0>} : vector<8x128xi32>
      %138 = tpu.iota {dimensions = array<i32: 1>} : vector<8x128xi32>
      %c0_i32_51 = arith.constant 0 : i32
      %139 = vector.broadcast %c0_i32_51 : i32 to vector<8x128xi32>
      %140 = arith.cmpi eq, %137, %139 : vector<8x128xi32>
      %c0_i32_52 = arith.constant 0 : i32
      %141 = vector.broadcast %c0_i32_52 : i32 to vector<8x128xi32>
      %142 = arith.cmpi eq, %138, %141 : vector<8x128xi32>
      %143 = arith.andi %140, %142 : vector<8x128xi1>
      %cst_53 = arith.constant 0.000000e+00 : f32
      %144 = vector.broadcast %136 : f32 to vector<8x128xf32>
      %145 = vector.broadcast %cst_53 : f32 to vector<8x128xf32>
      %146 = arith.select %143, %144, %145 : vector<8x128xi1>, vector<8x128xf32>
      %c0_54 = arith.constant 0 : index
      %c2 = arith.constant 2 : index
      %c0_55 = arith.constant 0 : index
      %c0_56 = arith.constant 0 : index
      %147 = vector.load %arg10[%c0_54, %c2, %c0_55, %c0_56] : memref<1x4x8x128xf32, #tpu.memory_space<vmem>>, vector<1x1x8x128xf32>
      %148 = vector.shape_cast %147 : vector<1x1x8x128xf32> to vector<8x128xf32>
      %149 = vector.shape_cast %146 : vector<8x128xf32> to vector<1x1x8x128xf32>
      tpu.vector_store %arg10[%c0_54, %c2, %c0_55, %c0_56], %149 {strides = array<i32>} : memref<1x4x8x128xf32, #tpu.memory_space<vmem>>, vector<1x1x8x128xf32>,
    } else {
    }
    %c0 = arith.constant 0 : index
    %c0_1 = arith.constant 0 : index
    %c0_2 = arith.constant 0 : index
    %7 = vector.load %arg4[%c0, %c0_1, %c0_2] : memref<1x8x128xf32, #tpu.memory_space<vmem>>, vector<1x8x128xf32>
    %8 = vector.shape_cast %7 : vector<1x8x128xf32> to vector<8x128xf32>
    %c0_3 = arith.constant 0 : index
    %c0_4 = arith.constant 0 : index
    %c0_5 = arith.constant 0 : index
    %9 = vector.load %arg5[%c0_3, %c0_4, %c0_5] : memref<1x8x128xf32, #tpu.memory_space<vmem>>, vector<1x8x128xf32>
    %10 = vector.shape_cast %9 : vector<1x8x128xf32> to vector<8x128xf32>
    %c0_6 = arith.constant 0 : index
    %c0_7 = arith.constant 0 : index
    %c0_8 = arith.constant 0 : index
    %11 = vector.load %arg6[%c0_6, %c0_7, %c0_8] : memref<1x8x128xf32, #tpu.memory_space<vmem>>, vector<1x8x128xf32>
    %12 = vector.shape_cast %11 : vector<1x8x128xf32> to vector<8x128xf32>
    %13 = tpu.iota {dimensions = array<i32: 0>} : vector<8x128xi32>
    %14 = tpu.iota {dimensions = array<i32: 1>} : vector<8x128xi32>
    %c8_i32 = arith.constant 8 : i32
    %15 = arith.muli %arg1, %c8_i32 : i32
    %16 = vector.broadcast %15 : i32 to vector<8x128xi32>
    %17 = arith.addi %16, %13 : vector<8x128xi32>
    %c128_i32 = arith.constant 128 : i32
    %18 = vector.broadcast %c128_i32 : i32 to vector<8x128xi32>
    %19 = arith.muli %17, %18 : vector<8x128xi32>
    %20 = arith.addi %19, %14 : vector<8x128xi32>
    %c16_i32 = arith.constant 16 : i32
    %21 = arith.muli %1, %c16_i32 : i32
    %22 = vector.broadcast %21 : i32 to vector<8x128xi32>
    %23 = arith.cmpi slt, %20, %22 : vector<8x128xi32>
    %24 = arith.extui %23 : vector<8x128xi1> to vector<8x128xi32>
    %25 = arith.sitofp %24 : vector<8x128xi32> to vector<8x128xf32>
    %26 = arith.subf %8, %12 : vector<8x128xf32>
    %27 = arith.mulf %26, %25 : vector<8x128xf32>
    %28 = arith.subf %10, %12 : vector<8x128xf32>
    %29 = arith.mulf %28, %25 : vector<8x128xf32>
    %c0_9 = arith.constant 0 : index
    %c0_10 = arith.constant 0 : index
    %c0_11 = arith.constant 0 : index
    %c0_12 = arith.constant 0 : index
    %30 = vector.load %arg10[%c0_9, %c0_10, %c0_11, %c0_12] : memref<1x4x8x128xf32, #tpu.memory_space<vmem>>, vector<1x1x8x128xf32>
    %31 = vector.shape_cast %30 : vector<1x1x8x128xf32> to vector<8x128xf32>
    %32 = math.absf %27 : vector<8x128xf32>
    %33 = math.absf %29 : vector<8x128xf32>
    %34 = arith.addf %32, %33 : vector<8x128xf32>
    %35 = arith.addf %31, %34 : vector<8x128xf32>
    %c0_13 = arith.constant 0 : index
    %c0_14 = arith.constant 0 : index
    %c0_15 = arith.constant 0 : index
    %c0_16 = arith.constant 0 : index
    %36 = vector.load %arg10[%c0_13, %c0_14, %c0_15, %c0_16] : memref<1x4x8x128xf32, #tpu.memory_space<vmem>>, vector<1x1x8x128xf32>
    %37 = vector.shape_cast %36 : vector<1x1x8x128xf32> to vector<8x128xf32>
    %38 = vector.shape_cast %35 : vector<8x128xf32> to vector<1x1x8x128xf32>
    tpu.vector_store %arg10[%c0_13, %c0_14, %c0_15, %c0_16], %38 {strides = array<i32>} : memref<1x4x8x128xf32, #tpu.memory_space<vmem>>, vector<1x1x8x128xf32>,
    %c0_17 = arith.constant 0 : index
    %c1 = arith.constant 1 : index
    %c0_18 = arith.constant 0 : index
    %c0_19 = arith.constant 0 : index
    %39 = vector.load %arg10[%c0_17, %c1, %c0_18, %c0_19] : memref<1x4x8x128xf32, #tpu.memory_space<vmem>>, vector<1x1x8x128xf32>
    %40 = vector.shape_cast %39 : vector<1x1x8x128xf32> to vector<8x128xf32>
    %41 = arith.mulf %27, %27 : vector<8x128xf32>
    %42 = arith.mulf %29, %29 : vector<8x128xf32>
    %43 = arith.addf %41, %42 : vector<8x128xf32>
    %44 = arith.addf %40, %43 : vector<8x128xf32>
    %c0_20 = arith.constant 0 : index
    %c1_21 = arith.constant 1 : index
    %c0_22 = arith.constant 0 : index
    %c0_23 = arith.constant 0 : index
    %45 = vector.load %arg10[%c0_20, %c1_21, %c0_22, %c0_23] : memref<1x4x8x128xf32, #tpu.memory_space<vmem>>, vector<1x1x8x128xf32>
    %46 = vector.shape_cast %45 : vector<1x1x8x128xf32> to vector<8x128xf32>
    %47 = vector.shape_cast %44 : vector<8x128xf32> to vector<1x1x8x128xf32>
    tpu.vector_store %arg10[%c0_20, %c1_21, %c0_22, %c0_23], %47 {strides = array<i32>} : memref<1x4x8x128xf32, #tpu.memory_space<vmem>>, vector<1x1x8x128xf32>,
    %c0_24 = arith.constant 0 : index
    %c0_25 = arith.constant 0 : index
    %c0_26 = arith.constant 0 : index
    %48 = vector.load %arg9[%c0_24, %c0_25, %c0_26] : memref<1x64x128xf32, #tpu.memory_space<vmem>>, vector<1x64x128xf32>
    %49 = vector.shape_cast %48 : vector<1x64x128xf32> to vector<64x128xf32>
    %50 = arith.sitofp %1 : i32 to f32
    %cst = arith.constant 1.000000e+00 : f32
    %51 = arith.divf %cst, %50 : f32
    %52 = arith.sitofp %3 : i32 to f32
    %cst_27 = arith.constant 1.000000e+00 : f32
    %53 = arith.divf %cst_27, %52 : f32
    %54 = tpu.iota {dimensions = array<i32: 0>} : vector<64x1xi32>
    %c64_i32 = arith.constant 64 : i32
    %55 = arith.muli %arg1, %c64_i32 : i32
    %56 = vector.broadcast %55 : i32 to vector<64x1xi32>
    %57 = arith.addi %54, %56 : vector<64x1xi32>
    %58 = tpu.iota {dimensions = array<i32: 1>} : vector<1x128xi32>
    %59 = arith.sitofp %57 : vector<64x1xi32> to vector<64x1xf32>
    %60 = vector.broadcast %51 : f32 to vector<64x1xf32>
    %61 = arith.mulf %59, %60 : vector<64x1xf32>
    %62 = arith.sitofp %58 : vector<1x128xi32> to vector<1x128xf32>
    %63 = vector.broadcast %53 : f32 to vector<1x128xf32>
    %64 = arith.mulf %62, %63 : vector<1x128xf32>
    %65 = vector.broadcast %64 : vector<1x128xf32> to vector<64x128xf32>
    %66 = vector.broadcast %61 : vector<64x1xf32> to vector<64x128xf32>
    %67 = arith.subf %65, %66 : vector<64x128xf32>
    %68 = arith.mulf %67, %67 : vector<64x128xf32>
    %cst_28 = arith.constant -3.125000e+00 : f32
    %69 = vector.broadcast %cst_28 : f32 to vector<64x128xf32>
    %70 = arith.mulf %68, %69 : vector<64x128xf32>
    %71 = math.exp %70 : vector<64x128xf32>
    %cst_29 = arith.constant 1.000000e+00 : f32
    %72 = vector.broadcast %cst_29 : f32 to vector<64x128xf32>
    %73 = arith.subf %72, %71 : vector<64x128xf32>
    %74 = vector.broadcast %1 : i32 to vector<64x1xi32>
    %75 = arith.cmpi slt, %57, %74 : vector<64x1xi32>
    %76 = vector.broadcast %3 : i32 to vector<1x128xi32>
    %77 = arith.cmpi slt, %58, %76 : vector<1x128xi32>
    %78 = vector.broadcast %75 : vector<64x1xi1> to vector<64x128xi1>
    %79 = vector.broadcast %77 : vector<1x128xi1> to vector<64x128xi1>
    %80 = arith.andi %78, %79 : vector<64x128xi1>
    %c0_30 = arith.constant 0 : index
    %c3 = arith.constant 3 : index
    %c0_31 = arith.constant 0 : index
    %c0_32 = arith.constant 0 : index
    %81 = vector.load %arg10[%c0_30, %c3, %c0_31, %c0_32] : memref<1x4x8x128xf32, #tpu.memory_space<vmem>>, vector<1x1x8x128xf32>
    %82 = vector.shape_cast %81 : vector<1x1x8x128xf32> to vector<8x128xf32>
    %83 = arith.mulf %73, %49 : vector<64x128xf32>
    %cst_33 = arith.constant 0.000000e+00 : f32
    %84 = vector.broadcast %cst_33 : f32 to vector<64x128xf32>
    %85 = arith.select %80, %83, %84 : vector<64x128xi1>, vector<64x128xf32>
    %86 = vector.extract_strided_slice %85 {offsets = [0, 0], sizes = [8, 128], strides = [1, 1]} : vector<64x128xf32> to vector<8x128xf32>
    %87 = vector.extract_strided_slice %85 {offsets = [8, 0], sizes = [8, 128], strides = [1, 1]} : vector<64x128xf32> to vector<8x128xf32>
    %88 = arith.addf %86, %87 : vector<8x128xf32>
    %89 = vector.extract_strided_slice %85 {offsets = [16, 0], sizes = [8, 128], strides = [1, 1]} : vector<64x128xf32> to vector<8x128xf32>
    %90 = arith.addf %88, %89 : vector<8x128xf32>
    %91 = vector.extract_strided_slice %85 {offsets = [24, 0], sizes = [8, 128], strides = [1, 1]} : vector<64x128xf32> to vector<8x128xf32>
    %92 = arith.addf %90, %91 : vector<8x128xf32>
    %93 = vector.extract_strided_slice %85 {offsets = [32, 0], sizes = [8, 128], strides = [1, 1]} : vector<64x128xf32> to vector<8x128xf32>
    %94 = arith.addf %92, %93 : vector<8x128xf32>
    %95 = vector.extract_strided_slice %85 {offsets = [40, 0], sizes = [8, 128], strides = [1, 1]} : vector<64x128xf32> to vector<8x128xf32>
    %96 = arith.addf %94, %95 : vector<8x128xf32>
    %97 = vector.extract_strided_slice %85 {offsets = [48, 0], sizes = [8, 128], strides = [1, 1]} : vector<64x128xf32> to vector<8x128xf32>
    %98 = arith.addf %96, %97 : vector<8x128xf32>
    %99 = vector.extract_strided_slice %85 {offsets = [56, 0], sizes = [8, 128], strides = [1, 1]} : vector<64x128xf32> to vector<8x128xf32>
    %100 = arith.addf %98, %99 : vector<8x128xf32>
    %101 = arith.addf %82, %100 : vector<8x128xf32>
    %c0_34 = arith.constant 0 : index
    %c3_35 = arith.constant 3 : index
    %c0_36 = arith.constant 0 : index
    %c0_37 = arith.constant 0 : index
    %102 = vector.load %arg10[%c0_34, %c3_35, %c0_36, %c0_37] : memref<1x4x8x128xf32, #tpu.memory_space<vmem>>, vector<1x1x8x128xf32>
    %103 = vector.shape_cast %102 : vector<1x1x8x128xf32> to vector<8x128xf32>
    %104 = vector.shape_cast %101 : vector<8x128xf32> to vector<1x1x8x128xf32>
    tpu.vector_store %arg10[%c0_34, %c3_35, %c0_36, %c0_37], %104 {strides = array<i32>} : memref<1x4x8x128xf32, #tpu.memory_space<vmem>>, vector<1x1x8x128xf32>,
    return
  }
  func.func @transform_0(%arg0: i32, %arg1: i32, %arg2: memref<2xi32, #tpu.memory_space<smem>>, %arg3: memref<2xi32, #tpu.memory_space<smem>>) -> (i32, i32, i32) {
    %c0_i32 = arith.constant 0 : i32
    %c0_i32_0 = arith.constant 0 : i32
    return %arg0, %arg1, %c0_i32 : i32, i32, i32
  }
  func.func @transform_1(%arg0: i32, %arg1: i32, %arg2: memref<2xi32, #tpu.memory_space<smem>>, %arg3: memref<2xi32, #tpu.memory_space<smem>>) -> (i32, i32, i32) {
    %c0_i32 = arith.constant 0 : i32
    %c0_i32_0 = arith.constant 0 : i32
    return %arg0, %arg1, %c0_i32 : i32, i32, i32
  }
  func.func @transform_2(%arg0: i32, %arg1: i32, %arg2: memref<2xi32, #tpu.memory_space<smem>>, %arg3: memref<2xi32, #tpu.memory_space<smem>>) -> (i32, i32, i32) {
    %c0_i32 = arith.constant 0 : i32
    %c0_i32_0 = arith.constant 0 : i32
    return %arg0, %arg1, %c0_i32 : i32, i32, i32
  }
  func.func @transform_3(%arg0: i32, %arg1: i32, %arg2: memref<2xi32, #tpu.memory_space<smem>>, %arg3: memref<2xi32, #tpu.memory_space<smem>>) -> (i32, i32) {
    %c0_i32 = arith.constant 0 : i32
    %c0_i32_0 = arith.constant 0 : i32
    %c0_i32_1 = arith.constant 0 : i32
    return %c0_i32, %c0_i32_0 : i32, i32
  }
  func.func @transform_4(%arg0: i32, %arg1: i32, %arg2: memref<2xi32, #tpu.memory_space<smem>>, %arg3: memref<2xi32, #tpu.memory_space<smem>>) -> (i32, i32) {
    %c0_i32 = arith.constant 0 : i32
    %c0_i32_0 = arith.constant 0 : i32
    %c0_i32_1 = arith.constant 0 : i32
    return %c0_i32, %c0_i32_0 : i32, i32
  }
  func.func @transform_5(%arg0: i32, %arg1: i32, %arg2: memref<2xi32, #tpu.memory_space<smem>>, %arg3: memref<2xi32, #tpu.memory_space<smem>>) -> (i32, i32, i32) {
    %c0_i32 = arith.constant 0 : i32
    %c0_i32_0 = arith.constant 0 : i32
    return %arg0, %arg1, %c0_i32 : i32, i32, i32
  }
  func.func @transform_6(%arg0: i32, %arg1: i32, %arg2: memref<2xi32, #tpu.memory_space<smem>>, %arg3: memref<2xi32, #tpu.memory_space<smem>>) -> (i32, i32, i32, i32) {
    %c0_i32 = arith.constant 0 : i32
    %c0_i32_0 = arith.constant 0 : i32
    %c0_i32_1 = arith.constant 0 : i32
    %c0_i32_2 = arith.constant 0 : i32
    return %arg0, %c0_i32, %c0_i32_0, %c0_i32_1 : i32, i32, i32, i32
  }
}

</mosaic_0001>

<bundles_post_ra>
// kernel: tpu_custom_call.1
= control target key start
LH: loop header
LB: loop body
LE: loop exit
PB: predicated region body
PF: predicated region fallthrough
CT: control target
= control target key end

     0   :  { %s1215_s27 = smov [#allocation3]   ;;  %s1644_s0 = inlined_call_operand.hbm [shape: s32[2], index: 0, kind: input, shape index: {}]   ;;  %s1645_s2 = inlined_call_operand.hbm [shape: f32[2,8,128], index: 2, kind: input, shape index: {}]   ;;  %s1646_s3 = inlined_call_operand.hbm [shape: f32[2,8,128], index: 3, kind: input, shape index: {}]   ;;  %s1647_s4 = inlined_call_operand.hbm [shape: f32[2,8,128], index: 4, kind: input, shape index: {}]   ;;  %s1648_s5 = inlined_call_operand.vmem [shape: f32[2,64], index: 5, kind: input, shape index: {}]   ;;  %s1649_s6 = inlined_call_operand.vmem [shape: f32[2,64], index: 6, kind: input, shape index: {}]   ;;  %s1650_s7 = inlined_call_operand.hbm [shape: f32[2,64,128], index: 7, kind: input, shape index: {}]   ;;  %s1651_s8 = inlined_call_operand.hbm [shape: f32[2,4,8,128], index: 8, kind: output, shape index: {}]   ;;  %s1652_s1 = inlined_call_operand.vmem [shape: s32[2], index: 1, kind: input, shape index: {}]  }
   0x1   :  { %1659 = sst [smem:[#allocation25_spill]] %s1646_s3  ;;  %s15_s10 = sshll.u32 %s1652_s1, 4  ;;  %s16_s10 = int_to_ptr.vmem [resolvable:$true] %s15_s10 }
   0x2   :  { %14 = dma.hbm_to_smem %s1644_s0, 16, %s1215_s27, [#allocation2] }
   0x3   :  { %s999_s11 = scalar_lea.vmem %s16_s10, 16  ;;  %p1004_p1 = scmp.lt.s32.totalorder %s16_s10, %s16_s10 }
   0x4   :  { %p1000_p0 = scmp.ne.s32.totalorder %s16_s10, %s999_s11  ;;  %p1005_p2 = scmp.lt.s32.totalorder %s999_s11, %s999_s11 }
   0x6   :  { %p1006_p3 = por %p1005_p2, %p1004_p1 }
   0x8   :  { %p1007_p4 = pnand %p1006_p3, %p1000_p0 }
   0xa   :  { %1010 = shalt.err (!%p1007_p4)  }
   0xb   :  { %s1216_s12 = smov [#allocation4]  }
   0xc   :  { %18 = dma.vmem_to_smem %s16_s10, 16, %s1216_s12, [#allocation2] }
   0xd   :  { %1173 = dma.done.wait [#allocation2], 32 }
   0xe   :  { %1174 = vsyncadd [#allocation2], 4294967264 }
   0xf   :  { %20 = sfence }
  0x10   :  { %21 = vsyncpa [#allocation6], 0 }
  0x11   :  { %23 = vsyncpa [#allocation6 + $0x1], 0 }
  0x12   :  { %24 = vsyncpa [#allocation9], 0 }
  0x13   :  { %26 = vsyncpa [#allocation9 + $0x1], 0 }
  0x14   :  { %27 = vsyncpa [#allocation12], 0 }
  0x15   :  { %29 = vsyncpa [#allocation12 + $0x1], 0 }
  0x16   :  { %30 = vsyncpa [#allocation7], 0 }
  0x17   :  { %32 = vsyncpa [#allocation7 + $0x1], 0  ;;  %s1278_s0 = smov 0   ;;  %s1280_s1 = smov 0  }
  0x18   :  { %s1282_s13 = smov 0   ;;  %s1284_s14 = smov 0  }
  0x19   :  { %s1286_s15 = smov 0   ;;  %s1288_s16 = smov 0  }
  0x1a LB: > { %1660 = sst [smem:[#allocation19_spill]] %s1193_s0  ;;  %s1309_s17 = sadd.s32 4294967295, %s1213_s16   ;;  %s1213_s16 = sphi %s1288_s16, %s38_s16   ;;  %s1209_s15 = sphi %s1286_s15, %s1693_s15   ;;  %s1205_s14 = sphi %s1284_s14, %s1692_s14   ;;  %s1201_s13 = sphi %s1282_s13, %s1688_s13   ;;  %s1197_s1 = sphi %s1280_s1, %s1691_s1   ;;  %s1193_s0 = sphi %s1278_s0, %s1690_s0  }
  0x1b   : > { %1661 = sst [smem:[#allocation20_spill]] %s1201_s13  ;;  %s844_s18 = sadd.s32 4294967294, %s1213_s16  }
  0x1c   : > { %1662 = sst [smem:[#allocation21_spill]] %s1213_s16  ;;  %s50_s19 = sadd.s32 1, %s1209_s15 }
  0x1d   : > { %s59_s20 = sadd.s32 1, %s1201_s13  ;;  %p52_p5 = scmp.ge.s32.totalorder %s50_s19, 2 }
  0x1e   : > { %p66_p6 = scmp.ne.s32.totalorder %s1201_s13, %s1197_s1  ;;  %p67_p7 = scmp.eq.s32.totalorder %s1213_s16, 0 }
  0x1f   : > { %p72_p8 = scmp.ne.s32.totalorder %s1197_s1, %s1193_s0  ;;  %s1695_s19 = smov (%p52_p5, %s50_s19), 0 }
  0x20   : > { %1663 = sst [smem:[#allocation22_spill]] %s1695_s19  ;;  %p1321_p9 = por %p67_p7, %p66_p6 }
  0x21   : > { %p73_p10 = scmp.eq.s32.totalorder %s1309_s17, 0  ;;  %s54_s22 = ssub.s32 %s1209_s15, %s1695_s19 }
  0x22   : > { %p222_p11 = scmp.eq.s32.totalorder %s1309_s17, 1  ;;  %p57_p12 = scmp.eq.s32.totalorder %s54_s22, 0 }
  0x23   : > { %p1329_p13 = por %p73_p10, %p72_p8  ;;  %p228_p1 = scmp.eq.s32.totalorder %s844_s18, 1 }
  0x24   : > { %p1333_p0 = por %p222_p11, %p66_p6  ;;  %p910_p4 = scmp.lt.s32.totalorder %s1213_s16, 2 }
  0x25   : > { %s1338_s25 = scalar_select %p57_p12, %s1201_s13, %s59_s20  }
  0x26   : > { %p1340_p2 = por %p228_p1, %p72_p8  ;;  %s1347_s27 = sand.u32 1, %s1201_s13  }
  0x27   : > { %1667 = sst [smem:[#allocation23_spill]] %s1338_s25  ;;  %s1350_s28 = sshll.u32 %s1347_s27, 3 }
  0x28   : > { %s1668_s26 = scalar_select %p1340_p2, 1, 0 }
  0x29   : > { %s1353_s29 = sshll.u32 %s1209_s15, 7  ;;  %p1357_p5 = pnand %p910_p4, %p1321_p9 }
  0x2a   : > { %1669 = sst [smem:[#allocation24_spill]] %s1668_s26  ;;  %s273_s9 = sand.u32 1, %s1213_s16  }
  0x2b   : > { %s1671_s3 = sld [smem:[#allocation25_spill]]  ;;  %s277_s18 = scalar_lea.vmem [#allocation8], %s1350_s28 }
  0x2c   : > { %s285_s20 = sshll.u32 %s277_s18, 4  ;;  %p856_p6 = scmp.ge.s32.totalorder %s1213_s16, 1  ;;  %s286_s20 = int_to_ptr.vmem [resolvable:$true] %s285_s20 }
  0x2d   : > { %p332_p7 = scmp.lt.s32.totalorder %s1213_s16, 3  ;;  %s1369_s22 = scalar_lea.sflag [#allocation9], %s273_s9 }
  0x2e   : > { %p1013_p8 = pneg %p1357_p5  ;;  %s1024_s21 = scalar_lea.vmem %s286_s20, 128 }
  0x2f   : > { %p1025_p9 = scmp.ne.s32.totalorder %s286_s20, %s1024_s21  ;;  %s1217_s19 = smov [#allocation8]  }
  0x30   : > { %s1029_s25 = sshll.u32 %s1217_s19, 4  ;;  %s1030_s25 = int_to_ptr.vmem [resolvable:$false] %s1029_s25 }
  0x31   : > { %s283_s12 = scalar_lea.hbm %s1671_s3, %s1353_s29  ;;  %p1027_p10 = pnand %p1025_p9, %p1013_p8 }
  0x32   : > { %s1031_s10 = scalar_lea.vmem %s1030_s25, 256  ;;  %p1032_p12 = scmp.lt.s32.totalorder %s286_s20, %s1030_s25 }
  0x33   : > { %p1028_p11 = pneg %p1027_p10  ;;  %p1033_p1 = scmp.lt.s32.totalorder %s1031_s10, %s1024_s21 }
  0x35   : > { %p1034_p4 = por %p1033_p1, %p1032_p12 }
  0x37   : > { %p1035_p3 = pnand %p1034_p4, %p1028_p11 }
  0x39   : > { %1038 = shalt.err (!%p1035_p3)
}
  0x3a   : > { %899 = dma.hbm_to_vmem [thread:$0]  (!%p1357_p5), %s283_s12, 128, %s286_s20, %s1369_s22  }
  0x3b   : > { %p1383_p9 = pnand %p856_p6, %p332_p7  ;;  %s264_s11 = scalar_lea.hbm %s1645_s2, %s1353_s29 }
  0x3c   : > { %s258_s18 = scalar_lea.vmem [#allocation5], %s1350_s28  ;;  %s302_s13 = scalar_lea.hbm %s1647_s4, %s1353_s29 }
  0x3d   : > { %s266_s21 = sshll.u32 %s258_s18, 4  ;;  %s255_s26 = scalar_lea.sflag [#allocation6], %s1347_s27  ;;  %s267_s21 = int_to_ptr.vmem [resolvable:$true] %s266_s21 }
  0x3e   : > { %s1052_s0 = scalar_lea.vmem %s267_s21, 128  ;;  %s1218_s12 = smov [#allocation5]  }
  0x3f   : > { %p1053_p3 = scmp.ne.s32.totalorder %s267_s21, %s1052_s0  ;;  %s1057_s20 = sshll.u32 %s1218_s12, 4  ;;  %s1058_s20 = int_to_ptr.vmem [resolvable:$false] %s1057_s20 }
  0x40   : > { %s1059_s16 = scalar_lea.vmem %s1058_s20, 256  ;;  %p1060_p10 = scmp.lt.s32.totalorder %s267_s21, %s1058_s20 }
  0x41   : > { %p1055_p6 = pnand %p1053_p3, %p1013_p8  ;;  %p1061_p11 = scmp.lt.s32.totalorder %s1059_s16, %s1052_s0 }
  0x43   : > { %p1056_p7 = pneg %p1055_p6  ;;  %p1062_p12 = por %p1061_p11, %p1060_p10 }
  0x45   : > { %p1063_p1 = pnand %p1062_p12, %p1056_p7 }
  0x47   : > { %1066 = shalt.err (!%p1063_p1)
}
  0x48   : > { %896 = dma.hbm_to_vmem [thread:$0]  (!%p1357_p5), %s264_s11, 128, %s267_s21, %s255_s26  }
  0x49   : > { %s296_s3 = scalar_lea.vmem [#allocation10], %s1350_s28  ;;  %s853_s9 = sshll.u32 %s1347_s27, 6 }
  0x4a   : > { %s304_s25 = sshll.u32 %s296_s3, 4  ;;  %s1219_s0 = smov [#allocation10]   ;;  %s305_s25 = int_to_ptr.vmem [resolvable:$true] %s304_s25 }
  0x4b   : > { %s1080_s18 = scalar_lea.vmem %s305_s25, 128  ;;  %s1085_s16 = sshll.u32 %s1219_s0, 4  ;;  %s1086_s16 = int_to_ptr.vmem [resolvable:$false] %s1085_s16 }
  0x4c   : > { %p1081_p4 = scmp.ne.s32.totalorder %s305_s25, %s1080_s18  ;;  %s1087_s10 = scalar_lea.vmem %s1086_s16, 256 }
  0x4d   : > { %p1088_p7 = scmp.lt.s32.totalorder %s305_s25, %s1086_s16  ;;  %p1089_p10 = scmp.lt.s32.totalorder %s1087_s10, %s1080_s18 }
  0x4e   : > { %p1083_p3 = pnand %p1081_p4, %p1013_p8 }
  0x4f   : > { %p1090_p11 = por %p1089_p10, %p1088_p7 }
  0x50   : > { %p1084_p6 = pneg %p1083_p3 }
  0x52   : > { %p1091_p12 = pnand %p1090_p11, %p1084_p6 }
  0x54   : > { %1094 = shalt.err (!%p1091_p12)
}
  0x55   : > { %902 = dma.hbm_to_vmem [thread:$0]  (!%p1357_p5), %s302_s13, 128, %s305_s25, %s1369_s22  }
  0x56   : > { %s875_s11 = sshll.u32 %s1209_s15, 10  ;;  %s315_s3 = scalar_lea.vmem [#allocation11], %s853_s9 }
  0x57   : > { %s323_s20 = scalar_lea.hbm %s1650_s7, %s875_s11  ;;  %s324_s18 = sshll.u32 %s315_s3, 4  ;;  %s325_s18 = int_to_ptr.vmem [resolvable:$true] %s324_s18 }
  0x58   : > { %s312_s0 = scalar_lea.sflag [#allocation12], %s1347_s27  ;;  %s1108_s16 = scalar_lea.vmem %s325_s18, 1024 }
  0x59   : > { %p1109_p1 = scmp.ne.s32.totalorder %s325_s18, %s1108_s16  ;;  %s1220_s29 = smov [#allocation11]  }
  0x5a   : > { %s1113_s10 = sshll.u32 %s1220_s29, 4  ;;  %s1114_s10 = int_to_ptr.vmem [resolvable:$false] %s1113_s10 }
  0x5b   : > { %p1111_p4 = pnand %p1109_p1, %p1013_p8  ;;  %s1115_s26 = scalar_lea.vmem %s1114_s10, 2048 }
  0x5c   : > { %p1116_p6 = scmp.lt.s32.totalorder %s325_s18, %s1114_s10  ;;  %p1117_p7 = scmp.lt.s32.totalorder %s1115_s26, %s1108_s16 }
  0x5d   : > { %p1112_p3 = pneg %p1111_p4 }
  0x5e   : > { %p1118_p10 = por %p1117_p7, %p1116_p6 }
  0x60   : > { %p1119_p11 = pnand %p1118_p10, %p1112_p3 }
  0x62   : > { %1122 = shalt.err (!%p1119_p11)
}
  0x63   : > { %s1221_s13 = smov 128   ;;  %s1222_s22 = smov 8  }
  0x64   : > { %905 = dma.hbm_to_vmem [thread:$0]  (!%p1357_p5), %s323_s20, 1024, %s325_s18, %s312_s0, %s1221_s13, %s1221_s13, %s1222_s22  }
  0x65   : > { %336 = sbr.rel (%p1383_p9) target bundleno = 424 (0x1a8), region = 44  ;;  %s1428_s27 = sand.u32 (!%p1383_p9), 1, %s1197_s1  }
  0x66   : > { %s857_s25 = sshll.u32 (!%p1383_p9), %s1428_s27, 3  ;;  %s339_s9 = scalar_lea.sflag (!%p1383_p9), [#allocation6], %s1428_s27 }
  0x67   : > { %s342_s28 = scalar_lea.vmem (!%p1383_p9), [#allocation5], %s857_s25 }
  0x6a   : > { %1176 = dma.done.wait (%p1329_p13), %s339_s9, 128  }
  0x6b   : > { %1178 = vsyncadd (%p1329_p13), %s339_s9, 4294967168  ;;  %s347_s30 = sand.u32 1, %s1309_s17   ;;  %s351_s19 = scalar_lea.vmem [#allocation8], %s857_s25 }
  0x6c   : > { %s348_s11 = scalar_lea.sflag [#allocation9], %s347_s30 }
  0x6d   : > { %1180 = dma.done.wait (%p1329_p13), %s348_s11, 256  }
  0x6e   : > { %1182 = vsyncadd (%p1329_p13), %s348_s11, 4294967040  ;;  %s860_s21 = sshll.u32 %s1428_s27, 6  ;;  %s360_s12 = scalar_lea.vmem [#allocation10], %s857_s25 }
  0x6f   : > { %s366_s20 = scalar_lea.sflag [#allocation12], %s1428_s27  ;;  %s1443_s3 = scalar_lea.vmem [#allocation11], %s860_s21 }
  0x70   : > { %1184 = dma.done.wait (%p1329_p13), %s366_s20, 1024  }
  0x71   : > { %1186 = vsyncadd (%p1329_p13), %s366_s20, 4294966272  ;;  %v428_v0 = vlaneseq  ;;  %s1450_s17 = sld [smem:[#allocation3 + %s1205_s14]]  ;;  %s424_s16 = scalar_lea.vmem %s1648_s5, %s1205_s14  ;;  %v475_v6 = vld [vmem:[%s342_s28] sm:$0xff]  ;;  %v476_v8 = vld [vmem:[%s351_s19] sm:$0xff]  ;;  %v1223_v14 = vmov 0.0   ;;  %vm455_vm3 = vcmask 516096  }
  0x72   : > { %v425_v5 = vld [vmem:[%s424_s16] sm:$0x1]  ;;  %s861_s29 = sshll.u32 %s1428_s27, 5  ;;  %s426_s22 = scalar_lea.vmem %s1649_s6, %s1205_s14 }
  0x73   : > { %v1452_v1 = vshrl.u32 %v428_v0, 7  ;;  %v1458_v2 = vand.u32 127, %v428_v0  ;;  %v437_v7 = vand.u32 2147483647, %v425_v5  ;;  %v477_v9 = vld [vmem:[%s360_s12] sm:$0xff]  ;;  %s1464_s10 = scalar_lea.vmem [#allocation13], %s861_s29 }
  0x74   : > { %v492_v11 = vsub.f32 %v475_v6, %v477_v9  ;;  %v494_v13 = vsub.f32 %v476_v8, %v477_v9  ;;  %v427_v28 = vld [vmem:[%s426_s22] sm:$0x1]  ;;  %v434_v30 = vmax.f32 %v425_v5, 0.0  ;;  %s1478_s25 = sld [smem:[#allocation4 + %s1205_s14]]  ;;  %s876_s21 = sshll.u32 %s1205_s14, 9 }
  0x75   : > { %v485_v3 = vmul.u32 128, %v1452_v1  ;;  %v438_v12 = vsub.f32 0.0, %v437_v7  ;;  %v435_v31 = vmul.f32 %v427_v28, %v425_v5  ;;  %v451_v33 = vmul.f32 0.0, %v427_v28  ;;  %s688_s12 = sshll.u32 %s1464_s10, 4  ;;  %s675_s18 = scalar_lea.sflag [#allocation7], %s1428_s27  ;;  %s1595_s12 = int_to_ptr.vmem [resolvable:$true] %s688_s12 }
  0x76   : > { %vm468_vm4 = vcmp.eq.s32.totalorder %v1452_v1, 0  ;;  %vm469_vm5 = vcmp.eq.s32.totalorder %v1458_v2, 0  ;;  %v1485_v57 = vadd.s32 8, %v1452_v1  ;;  %v1488_v58 = vadd.s32 16, %v1452_v1  ;;  %s1123_s0 = scalar_lea.vmem %s1595_s12, 512  ;;  %s1224_s14 = smov [#allocation13]  }
  0x77   : > { %v486_v4 = vadd.s32 %v485_v3, %v1458_v2  ;;  %s864_s23 = sshll.u32 %s1450_s17, 4  ;;  %v439_v16 = vmul.f32 1.442695, %v438_v12  ;;  %v1473_v34 = vstv %s1450_s17  ;;  %v436_v37 = vsub.f32 %v434_v30, %v435_v31  ;;  %s517_s9 = scvt.s32.f32 %s1450_s17  ;;  %vm470_vm6 = vmand %vm468_vm4, %vm469_vm5 }
  0x78   : > { %v488_v10 = vstv %s864_s23  ;;  %vm431_vm2 = vcmp.lt.s32.totalorder %v1458_v2, %v1473_v34  ;;  %v452_v39 = vadd.f32 1.0, %v451_v33  ;;  %v1491_v59 = vadd.s32 24, %v1452_v1  ;;  %s1593_s17 = scalar_lea.hbm %s1651_s8, %s876_s21  ;;  %p1124_p13 = scmp.ne.s32.totalorder %s1595_s12, %s1123_s0 }
  0x79   : > { %vm489_vm0 = vcmp.lt.s32.totalorder %v486_v4, %v488_v10  ;;  %967 = vpow2.f32 %v439_v16  ;;  %v862_v42 = vsel %vm431_vm2, 1.0, %v1223_v14  ;;  %v518_v46 = vstv %s517_s9  ;;  %s1127_s16 = sshll.u32 %s1224_s14, 4  ;;  %s1128_s16 = int_to_ptr.vmem [resolvable:$false] %s1127_s16 }
  0x7a   : > { %v865_v15 = vsel %vm489_vm0, 1.0, %v1223_v14  ;;  %s521_s28 = scvt.s32.f32 %s1478_s25  ;;  %v1494_v60 = vadd.s32 32, %v1452_v1  ;;  %v1497_v61 = vadd.s32 40, %v1452_v1  ;;  %v1500_v62 = vadd.s32 48, %v1452_v1  ;;  %p1125_p5 = pnand %p1124_p13, %p1333_p0 }
  0x7b   : > { %v493_v17 = vmul.f32 %v865_v15, %v492_v11  ;;  %v495_v18 = vmul.f32 %v865_v15, %v494_v13  ;;  %v1503_v63 = vadd.s32 56, %v1452_v1  ;;  %v542_v0 = vcvt.s32.f32 %v1452_v1  ;;  %s1129_s23 = scalar_lea.vmem %s1128_s16, 1024  ;;  %p1130_p9 = scmp.lt.s32.totalorder %s1595_s12, %s1128_s16 }
  0x7c   : > { %v522_v47 = vstv %s521_s28  ;;  %v543_v3 = vcvt.s32.f32 %v1485_v57  ;;  %v544_v4 = vcvt.s32.f32 %v1488_v58  ;;  %v545_v5 = vcvt.s32.f32 %v1491_v59  ;;  %p1126_p8 = pneg %p1125_p5  ;;  %p1131_p12 = scmp.lt.s32.totalorder %s1129_s23, %s1123_s0 }
  0x7d   : > { %v497_v19 = vand.u32 2147483647, %v493_v17  ;;  %v498_v20 = vand.u32 2147483647, %v495_v18  ;;  %v504_v21 = vmul.f32 %v493_v17, %v493_v17  ;;  %v505_v22 = vmul.f32 %v495_v18, %v495_v18 }
  0x7e   : > { %v546_v6 = vcvt.s32.f32 %v1494_v60  ;;  %v547_v8 = vcvt.s32.f32 %v1497_v61  ;;  %v548_v9 = vcvt.s32.f32 %v1500_v62  ;;  %v549_v10 = vcvt.s32.f32 %v1503_v63  ;;  %p1132_p1 = por %p1131_p12, %p1130_p9 }
  0x7f   : > { %v499_v23 = vadd.f32 %v498_v20, %v497_v19  ;;  %v506_v24 = vadd.f32 %v505_v22, %v504_v21  ;;  %v559_v13 = vcvt.s32.f32 %v1458_v2  ;;  %vm611_vm8 = vcmp.lt.s32.totalorder %v1452_v1, %v1473_v34 }
  0x80   : > { %vm612_vm9 = vcmp.lt.s32.totalorder %v1485_v57, %v1473_v34  ;;  %vm613_vm10 = vcmp.lt.s32.totalorder %v1488_v58, %v1473_v34  ;;  %vm614_vm13 = vcmp.lt.s32.totalorder %v1491_v59, %v1473_v34  ;;  %vm615_vm15 = vcmp.lt.s32.totalorder %v1494_v60, %v1473_v34  ;;  %v515_v59 = vld [vmem:[%s1443_s3 + $0x30] sm:$0xff]  ;;  %p1133_p4 = pnand %p1132_p1, %p1126_p8 }
  0x81   : > { %501 = vst [vmem:[%s1464_s10] sm:$0xff] %v499_v23  ;;  %867 = vst [vmem:[%s1464_s10 + $0x8] sm:$0xff] %v506_v24  ;;  %vm618_vm5 = vcmp.lt.s32.totalorder %v1503_v63, %v1473_v34 }
  0x86   : > { %v968_v25 = vpop.eup %967 }
  0x87   : > { %v441_v26 = vadd.f32 1.0, %v968_v25  ;;  %v444_v27 = vmul.f32 -0.5, %v968_v25  ;;  %v447_v32 = vand.u32 2147483647, %v968_v25 }
  0x89   : > { %969 = vlog2.f32 %v441_v26  ;;  %v445_v29 = vadd.f32 1.0, %v444_v27  ;;  %vm448_vm1 = vcmp.lt.f32.partialorder %v447_v32, 0.0004427343 }
  0x8a   : > { %971 = vrcp.f32 %v518_v46 }
  0x8b   : > { %v446_v35 = vmul.f32 %v968_v25, %v445_v29  ;;  %973 = vrcp.f32 %v522_v47 }
  0x96   : > { %v970_v36 = vpop.eup %969 }
  0x97   : > { %v443_v38 = vmul.f32 0.6931472, %v970_v36  ;;  %v972_v54 = vpop.eup %971 }
  0x98   : > { %v974_v56 = vpop.eup %973 }
  0x99   : > { %v449_v40 = vsel %vm448_vm1, %v446_v35, %v443_v38  ;;  %vm616_vm1 = vcmp.lt.s32.totalorder %v1497_v61, %v1473_v34  ;;  %v516_v61 = vld [vmem:[%s1443_s3 + $0x38] sm:$0xff] }
  0x9a   : > { %v450_v41 = vadd.f32 %v449_v40, %v436_v37 }
  0x9c   : > { %v453_v43 = vmul.f32 %v452_v39, %v450_v41 }
  0x9e   : > { %v454_v44 = vmul.f32 %v862_v42, %v453_v43 }
  0xa0   : > { %v456_v45 = vsel %vm455_vm3, %v454_v44, 0.0  ;;  %vm617_vm3 = vcmp.lt.s32.totalorder %v1500_v62, %v1473_v34 }
  0xa1   : > { %457 = vadd.xlane.f32.xlu0 %v456_v45 }
 0x12a   : > { %v458_v48 = vpop.xlane.xlu0 %457 }
 0x12b   : > { %v459_v49 = vrot.slane %v458_v48, 4 }
 0x12d   : > { %v460_v50 = vadd.f32 %v459_v49, %v458_v48 }
 0x12f   : > { %v461_v51 = vrot.slane %v460_v50, 2 }
 0x131   : > { %v462_v52 = vadd.f32 %v461_v51, %v460_v50 }
 0x133   : > { %v463_v53 = vrot.slane %v462_v52, 1 }
 0x135   : > { %v464_v55 = vadd.f32 %v463_v53, %v462_v52 }
 0x137   : > { %877 = vpush %v464_v55 }
 0x138   : > { %879 = vpush %v972_v54 }
 0x139   : > { %881 = vpush %v974_v56 }
 0x168   : > { %s878_s30 = spop %877 }
 0x169   : > { %v471_v7 = vstv %s878_s30  ;;  %s880_s11 = spop %879 }
 0x16a   : > { %v472_v11 = vsel %vm470_vm6, %v471_v7, 0.0  ;;  %v550_v12 = vstv %s880_s11  ;;  %s882_s19 = spop %881  ;;  %v510_v7 = vld [vmem:[%s1443_s3 + $0x8] sm:$0xff] }
 0x16b   : > { %863 = vst [vmem:[%s1464_s10 + $0x10] sm:$0xff] %v472_v11  ;;  %v551_v14 = vmul.f32 %v550_v12, %v542_v0  ;;  %v552_v15 = vmul.f32 %v550_v12, %v543_v3  ;;  %v553_v16 = vmul.f32 %v550_v12, %v544_v4  ;;  %v554_v17 = vmul.f32 %v550_v12, %v545_v5  ;;  %v509_v5 = vld [vmem:[%s1443_s3] sm:$0xff] }
 0x16c   : > { %v555_v18 = vmul.f32 %v550_v12, %v546_v6  ;;  %v556_v19 = vmul.f32 %v550_v12, %v547_v8  ;;  %v557_v20 = vmul.f32 %v550_v12, %v548_v9  ;;  %v558_v21 = vmul.f32 %v550_v12, %v549_v10  ;;  %v512_v12 = vld [vmem:[%s1443_s3 + $0x18] sm:$0xff] }
 0x16d   : > { %v560_v22 = vstv %s882_s19  ;;  %v619_v0 = vstv %s1478_s25 }
 0x16e   : > { %v561_v23 = vmul.f32 %v560_v22, %v559_v13  ;;  %vm1517_vm7 = vcmp.lt.s32.totalorder %v1458_v2, %v619_v0  ;;  %v511_v2 = vld [vmem:[%s1443_s3 + $0x10] sm:$0xff] }
 0x16f   : > { %vm1532_vm11 = vmand %vm611_vm8, %vm1517_vm7 }
 0x170   : > { %v562_v24 = vsub.f32 %v561_v23, %v551_v14  ;;  %v563_v25 = vsub.f32 %v561_v23, %v552_v15  ;;  %v564_v26 = vsub.f32 %v561_v23, %v553_v16  ;;  %v565_v27 = vsub.f32 %v561_v23, %v554_v17  ;;  %vm1538_vm12 = vmand %vm612_vm9, %vm1517_vm7 }
 0x171   : > { %v566_v28 = vsub.f32 %v561_v23, %v555_v18  ;;  %v567_v29 = vsub.f32 %v561_v23, %v556_v19  ;;  %v568_v30 = vsub.f32 %v561_v23, %v557_v20  ;;  %v569_v31 = vsub.f32 %v561_v23, %v558_v21  ;;  %vm1547_vm14 = vmand %vm613_vm10, %vm1517_vm7  ;;  %v513_v19 = vld [vmem:[%s1443_s3 + $0x20] sm:$0xff] }
 0x172   : > { %v570_v32 = vmul.f32 %v562_v24, %v562_v24  ;;  %v571_v33 = vmul.f32 %v563_v25, %v563_v25  ;;  %v572_v35 = vmul.f32 %v564_v26, %v564_v26  ;;  %v573_v36 = vmul.f32 %v565_v27, %v565_v27  ;;  %vm1563_vm0 = vmand %vm614_vm13, %vm1517_vm7 }
 0x173   : > { %v574_v37 = vmul.f32 %v566_v28, %v566_v28  ;;  %v575_v38 = vmul.f32 %v567_v29, %v567_v29  ;;  %v576_v39 = vmul.f32 %v568_v30, %v568_v30  ;;  %v577_v40 = vmul.f32 %v569_v31, %v569_v31  ;;  %v514_v29 = vld [vmem:[%s1443_s3 + $0x28] sm:$0xff]  ;;  %vm643_vm2 = vmand %vm615_vm15, %vm1517_vm7 }
 0x174   : > { %v578_v41 = vmul.f32 -3.125, %v570_v32  ;;  %v579_v42 = vmul.f32 -3.125, %v571_v33  ;;  %v580_v43 = vmul.f32 -3.125, %v572_v35  ;;  %v581_v44 = vmul.f32 -3.125, %v573_v36  ;;  %vm644_vm4 = vmand %vm616_vm1, %vm1517_vm7 }
 0x175   : > { %v582_v45 = vmul.f32 -3.125, %v574_v37  ;;  %v583_v46 = vmul.f32 -3.125, %v575_v38  ;;  %v584_v47 = vmul.f32 -3.125, %v576_v39  ;;  %v585_v51 = vmul.f32 -3.125, %v577_v40  ;;  %vm645_vm6 = vmand %vm617_vm3, %vm1517_vm7 }
 0x176   : > { %v586_v48 = vmul.f32 1.442695, %v578_v41  ;;  %v588_v49 = vmul.f32 1.442695, %v579_v42  ;;  %v590_v50 = vmul.f32 1.442695, %v580_v43  ;;  %vm646_vm8 = vmand %vm618_vm5, %vm1517_vm7 }
 0x177   : > { %v592_v52 = vmul.f32 1.442695, %v581_v44  ;;  %v594_v53 = vmul.f32 1.442695, %v582_v45  ;;  %v596_v54 = vmul.f32 1.442695, %v583_v46 }
 0x178   : > { %975 = vpow2.f32 %v586_v48  ;;  %v598_v55 = vmul.f32 1.442695, %v584_v47  ;;  %v600_v56 = vmul.f32 1.442695, %v585_v51 }
 0x179   : > { %977 = vpow2.f32 %v588_v49 }
 0x17a   : > { %979 = vpow2.f32 %v590_v50 }
 0x17b   : > { %981 = vpow2.f32 %v592_v52 }
 0x17c   : > { %983 = vpow2.f32 %v594_v53 }
 0x17d   : > { %985 = vpow2.f32 %v596_v54 }
 0x17e   : > { %987 = vpow2.f32 %v598_v55 }
 0x17f   : > { %989 = vpow2.f32 %v600_v56 }
 0x185   : > { %v976_v4 = vpop.eup %975 }
 0x186   : > { %v978_v6 = vpop.eup %977  ;;  %v602_v8 = vsub.f32 1.0, %v976_v4 }
 0x187   : > { %v980_v9 = vpop.eup %979  ;;  %v603_v10 = vsub.f32 1.0, %v978_v6 }
 0x188   : > { %v982_v1 = vpop.eup %981  ;;  %v604_v13 = vsub.f32 1.0, %v980_v9  ;;  %v649_v14 = vmul.f32 %v602_v8, %v509_v5 }
 0x189   : > { %v984_v15 = vpop.eup %983  ;;  %v605_v58 = vsub.f32 1.0, %v982_v1  ;;  %v650_v16 = vmul.f32 %v603_v10, %v510_v7 }
 0x18a   : > { %v986_v17 = vpop.eup %985  ;;  %v606_v20 = vsub.f32 1.0, %v984_v15  ;;  %v651_v21 = vmul.f32 %v604_v13, %v511_v2  ;;  %v657_v22 = vsel %vm1532_vm11, %v649_v14, 0.0 }
 0x18b   : > { %v988_v23 = vpop.eup %987  ;;  %v607_v24 = vsub.f32 1.0, %v986_v17  ;;  %v652_v25 = vmul.f32 %v605_v58, %v512_v12  ;;  %v658_v26 = vsel %vm1538_vm12, %v650_v16, 0.0 }
 0x18c   : > { %v990_v27 = vpop.eup %989  ;;  %v665_v30 = vadd.f32 %v658_v26, %v657_v22  ;;  %v608_v60 = vsub.f32 1.0, %v988_v23  ;;  %v653_v31 = vmul.f32 %v606_v20, %v513_v19  ;;  %v659_v32 = vsel %vm1547_vm14, %v651_v21, 0.0 }
 0x18d   : > { %v609_v35 = vsub.f32 1.0, %v990_v27  ;;  %v654_v36 = vmul.f32 %v607_v24, %v514_v29  ;;  %v660_v37 = vsel %vm1563_vm0, %v652_v25, 0.0 }
 0x18e   : > { %v666_v33 = vadd.f32 %v665_v30, %v659_v32  ;;  %v655_v39 = vmul.f32 %v608_v60, %v515_v59  ;;  %v661_v40 = vsel %vm643_vm2, %v653_v31, 0.0 }
 0x18f   : > { %v656_v41 = vmul.f32 %v609_v35, %v516_v61  ;;  %v662_v42 = vsel %vm644_vm4, %v654_v36, 0.0 }
 0x190   : > { %v667_v38 = vadd.f32 %v666_v33, %v660_v37  ;;  %v663_v44 = vsel %vm645_vm6, %v655_v39, 0.0 }
 0x191   : > { %v664_v34 = vsel %vm646_vm8, %v656_v41, 0.0 }
 0x192   : > { %v668_v62 = vadd.f32 %v667_v38, %v661_v40 }
 0x194   : > { %v669_v43 = vadd.f32 %v668_v62, %v662_v42 }
 0x196   : > { %v670_v45 = vadd.f32 %v669_v43, %v663_v44 }
 0x198   : > { %v671_v63 = vadd.f32 %v670_v45, %v664_v34 }
 0x19a   : > { %869 = vst [vmem:[%s1464_s10 + $0x18] sm:$0xff] %v671_v63 }
 0x19b   : > { %1136 = shalt.err (!%p1133_p4)
}
 0x19c   : > { %s1137_s29 = scalar_lea.hbm %s1593_s17, 512  ;;  %s1141_s13 = scalar_lea.hbm %s1651_s8, 1024 }
 0x19d   : > { %p1138_p3 = scmp.ne.s32.totalorder %s1593_s17, %s1137_s29  ;;  %p1142_p10 = scmp.lt.s32.totalorder %s1593_s17, %s1651_s8 }
 0x19e   : > { %p1143_p11 = scmp.lt.s32.totalorder %s1141_s13, %s1137_s29 }
 0x19f   : > { %p1139_p6 = pnand %p1138_p3, %p1333_p0 }
 0x1a0   : > { %p1144_p13 = por %p1143_p11, %p1142_p10 }
 0x1a1   : > { %p1140_p7 = pneg %p1139_p6 }
 0x1a3   : > { %p1145_p5 = pnand %p1144_p13, %p1140_p7 }
 0x1a5   : > { %1148 = shalt.err (!%p1145_p5)
}
 0x1a6   : > { %s1225_s9 = smov 128   ;;  %s1226_s28 = smov 8  }
 0x1a7   : > { %891 = dma.vmem_to_hbm [thread:$0]  (%p1333_p0), %s1595_s12, 512, %s1593_s17, %s675_s18, %s1225_s9, %s1225_s9, %s1226_s28  }
 0x1a8 PF: > { %s1683_s30 = sld [smem:[#allocation19_spill]] }
 0x1a9   : > { %s1685_s19 = sld [smem:[#allocation21_spill]] }
 0x1ae   : > { %s703_s21 = sand.u32 1, %s1683_s30  }
 0x1af   : > { %p1686_p8 = scmp.ge.s32.totalorder %s1685_s19, 2  ;;  %s704_s20 = scalar_lea.sflag [#allocation7], %s703_s21 }
 0x1b1   : > { %p907_p9 = pnand %p1686_p8, %p1340_p2 }
 0x1b3   : > { %p908_p12 = pneg %p907_p9 }
 0x1b5   : > { %1188 = dma.done.wait (%p908_p12), %s704_s20, 512  }
 0x1b6   : > { %1190 = vsyncadd (%p908_p12), %s704_s20, 4294966784  ;;  %s38_s16 = sadd.s32 1, %s1685_s19   ;;  %s1687_s3 = sld [smem:[#allocation20_spill]] }
 0x1b7   : > { %p35_p1 = scmp.ge.s32.totalorder %s38_s16, 4   ;;  %s1688_s13 = sld [smem:[#allocation23_spill]] }
 0x1b8   : > { %s1689_s24 = sld [smem:[#allocation22_spill]]  ;;  %s1690_s0 = smov %s1197_s1 }
 0x1b9   : > { %s1692_s14 = smov %s1209_s15 }
 0x1ba   :  { %37 = sbr.rel (!%p35_p1) target bundleno = 26 (0x1a), region = 135 }
 0x1bc   : > { %s1691_s1 = smov %s1687_s3 }
 0x1be   : > { %s1693_s15 = smov %s1689_s24 }
 0x1bf   :  { %709 = vsyncpa [#allocation6], 1 }
 0x1c0   :  { %711 = vsyncpa [#allocation6 + $0x1], 1 }
 0x1c1   :  { %712 = vsyncpa [#allocation9], 1 }
 0x1c2   :  { %714 = vsyncpa [#allocation9 + $0x1], 1 }
 0x1c3   :  { %715 = vsyncpa [#allocation12], 1 }
 0x1c4   :  { %717 = vsyncpa [#allocation12 + $0x1], 1 }
 0x1c5   :  { %718 = vsyncpa [#allocation7], 1 }
 0x1c6   :  { %720 = vsyncpa [#allocation7 + $0x1], 1 }

</bundles_post_ra>
